<compile_context>
chip_gen: v6e
topology: v6e:2x2x1
jax: 0.10.0
libtpu: 0.0.40
codegen_flags: <defaults>
</compile_context>

<pallas_src>
import functools

import jax
import jax.numpy as jnp
from jax import lax
from jax.experimental import pallas as pl
from jax.experimental.pallas import tpu as pltpu


def _attention_head_kernel(x_ref, wqkv_ref, bqkv_ref, o_ref, *, d_head, mask):
    """One grid step = one batch element.  All compute is 2-D over S rows."""
    H = d_head
    S = x_ref.shape[1]

    x = x_ref[0]                                                 # (S, D)

    # Fused QKV projection: a single MXU contraction over D.  The
    # 1/sqrt(d_head) scale is already folded into the Q columns of
    # wqkv / bqkv when mask=True (done once at init in the wrapper).
    qkv = jnp.dot(x, wqkv_ref[...],
                  preferred_element_type=jnp.float32) + bqkv_ref[...]   # (S, 3H)

    q = qkv[:, 0:H]
    k = qkv[:, H:2 * H]
    v = qkv[:, 2 * H:3 * H]

    # scores[i, j] = q[i, :] . k[j, :] — contraction on the last dims of both
    # operands; no explicit k.T materialized in the kernel body.
    scores = lax.dot_general(
        q, k,
        dimension_numbers=(((1,), (1,)), ((), ())),
        preferred_element_type=jnp.float32,
    )                                                            # (S, S)

    if mask:
        row = lax.broadcasted_iota(jnp.int32, (S, S), 0)
        col = lax.broadcasted_iota(jnp.int32, (S, S), 1)
        # Diagonal is never masked, so every row keeps a finite max (no NaN).
        logits = jnp.where(col > row, -jnp.inf, scores)
    else:
        # Intentional PyTorch quirk: the UNSCALED scores are softmaxed here
        # (the prep function does NOT fold the scale for this branch).
        logits = scores

    m = jnp.max(logits, axis=-1, keepdims=True)
    e = jnp.exp(logits - m)
    denom = jnp.sum(e, axis=-1, keepdims=True)                   # >= 1 always
    # EUP approx reciprocal (free VLIW slot) + one Newton step to recover
    # ~f32 accuracy; keeps the divide off the VPU path.
    r = pl.reciprocal(denom, approx=True)
    r = r * (2.0 - denom * r)
    p = e * r

    out = jnp.dot(p, v, preferred_element_type=jnp.float32)      # (S, H)

    # TODO(synk): with a single head the stored last dim is H=16 (<128 lanes),
    # so this store is lane-masked.  A lane-dense (>=128) output needs the
    # parent block's heads fused into one pallas_call (last dim n_heads*H);
    # for this standalone single-head module, an in-kernel (S,H)->(S*H,)
    # repack would cost more in relayout than the masked store saves at
    # these sizes.
    o_ref[0] = out.astype(o_ref.dtype)


def prepare_attention_head_params(wq, bq, wk, bk, wv, bv, *, mask=True):
    """One-time "module init" prep.

    Fuses Q/K/V into a single (D, 3H) weight and (1, 3H) bias, folding the
    1/sqrt(d_head) scale into the Q slice when the causal-mask branch (which
    softmaxes the scaled scores) is active.  mask=False intentionally skips
    the fold because that branch softmaxes the unscaled scores.
    """
    d_head = wq.shape[1]
    if mask:
        scale = jnp.asarray(1.0 / (d_head ** 0.5), wq.dtype)
        wq = wq * scale
        bq = bq * scale
    wqkv = jnp.concatenate([wq, wk, wv], axis=1)                 # (D, 3H)
    bqkv = jnp.concatenate([bq, bk, bv], axis=0)[None, :]        # (1, 3H)
    return wqkv, bqkv


def attention_head_apply(embeddings, wqkv, bqkv, *, mask=True):
    """embeddings: (B, S, D); wqkv: (D, 3H); bqkv: (1, 3H).  Returns (B, S, H)."""
    B, S, D = embeddings.shape
    H = wqkv.shape[1] // 3

    kernel = functools.partial(_attention_head_kernel, d_head=H, mask=mask)

    grid_spec = pltpu.PrefetchScalarGridSpec(
        num_scalar_prefetch=0,
        grid=(B,),                      # sharded across TensorCores on v7x
        in_specs=[
            pl.BlockSpec((1, S, D), lambda b: (b, 0, 0)),
            # Constant index_maps: weights/bias stay VMEM-resident across the
            # whole grid instead of being re-DMA'd every step.
            pl.BlockSpec((D, 3 * H), lambda b: (0, 0)),
            pl.BlockSpec((1, 3 * H), lambda b: (0, 0)),
        ],
        out_specs=pl.BlockSpec((1, S, H), lambda b: (b, 0, 0)),
    )

    # NOTE: at these toy sizes everything fits in a few KiB of VMEM; when B/S
    # grow, re-derive block sizes against v7x's 64 MiB VMEM and set
    # vmem_limit_bytes explicitly in CompilerParams.
    return pl.pallas_call(
        kernel,
        out_shape=jax.ShapeDtypeStruct((B, S, H), embeddings.dtype),
        grid_spec=grid_spec,
        compiler_params=pltpu.CompilerParams(
            dimension_semantics=("parallel",)),
    )(embeddings, wqkv, bqkv)


def attention_head(embeddings, wq, bq, wk, bk, wv, bv, *, mask=True):
    """Convenience one-shot API matching the original signature."""
    wqkv, bqkv = prepare_attention_head_params(wq, bq, wk, bk, wv, bv, mask=mask)
    return attention_head_apply(embeddings, wqkv, bqkv, mask=mask)


def _reference(embeddings, wq, bq, wk, bk, wv, bv, *, mask=True):
    q = embeddings @ wq + bq
    k = embeddings @ wk + bk
    v = embeddings @ wv + bv
    scores = jnp.einsum("bqd,bkd->bqk", q, k)
    scaled = scores / (wq.shape[1] ** 0.5)
    if mask:
        s = scores.shape[-1]
        causal = jnp.triu(jnp.ones((s, s), bool), k=1)
        logits = jnp.where(causal, -jnp.inf, scaled)
    else:
        logits = scores  # same intentional quirk as the module
    pat = jax.nn.softmax(logits, axis=-1)
    return jnp.einsum("bqk,bkd->bqd", pat, v)


if __name__ == "__main__":
    # Config: d_model=32, d_head=16, mask=True; batch=2, patch(seq)=8.
    B, S, D, H = 2, 8, 32, 16
    key = jax.random.PRNGKey(0)
    kx, k1, k2, k3, k4, k5, k6 = jax.random.split(key, 7)

    x = jax.random.normal(kx, (B, S, D), dtype=jnp.float32)

    # Deterministic parameter init mimicking nn.Linear (uniform +-1/sqrt(fan_in)).
    bound = 1.0 / (D ** 0.5)
    wq = jax.random.uniform(k1, (D, H), jnp.float32, -bound, bound)
    wk = jax.random.uniform(k2, (D, H), jnp.float32, -bound, bound)
    wv = jax.random.uniform(k3, (D, H), jnp.float32, -bound, bound)
    bq = jax.random.uniform(k4, (H,), jnp.float32, -bound, bound)
    bk = jax.random.uniform(k5, (H,), jnp.float32, -bound, bound)
    bv = jax.random.uniform(k6, (H,), jnp.float32, -bound, bound)
    # TODO(synk): self.output (d_head -> d_model Linear) is initialized in
    # __init__ but never used in forward(), so it is intentionally omitted.

    # "Module init": fuse weights + fold the softmax scale once, outside the
    # per-forward hot path.
    wqkv_m, bqkv_m = prepare_attention_head_params(
        wq, bq, wk, bk, wv, bv, mask=True)
    wqkv_n, bqkv_n = prepare_attention_head_params(
        wq, bq, wk, bk, wv, bv, mask=False)

    out = jax.block_until_ready(attention_head_apply(x, wqkv_m, bqkv_m, mask=True))
    ref = _reference(x, wq, bq, wk, bk, wv, bv, mask=True)
    assert out.shape == (B, S, H)
    assert jnp.allclose(out, ref, atol=1e-5, rtol=1e-5)

    # Also exercise the mask=False quirk branch (softmax over unscaled scores).
    out_nm = jax.block_until_ready(
        attention_head_apply(x, wqkv_n, bqkv_n, mask=False))
    ref_nm = _reference(x, wq, bq, wk, bk, wv, bv, mask=False)
    assert jnp.allclose(out_nm, ref_nm, atol=1e-5, rtol=1e-5)

    print("KERNEL_OK")
</pallas_src>

<mosaic_0001>
module attributes {stable_mosaic.version = 11 : i64} {
  func.func @_attention_head_kernel(%arg0: i32, %arg1: memref<1x8x32xf32, #tpu.memory_space<vmem>>, %arg2: memref<32x48xf32, #tpu.memory_space<vmem>>, %arg3: memref<1x48xf32, #tpu.memory_space<vmem>>, %arg4: memref<1x8x16xf32, #tpu.memory_space<vmem>>) attributes {dimension_semantics = [#tpu.dimension_semantics<parallel>], iteration_bounds = array<i64: 2>, scalar_prefetch = 0 : i64, scratch_operands = 0 : i64, tpu.core_type = #tpu.core_type<tc>, window_params = [{transform_indices = @transform_0, window_bounds = array<i64: 1, 8, 32>}, {pipeline_mode = #tpu.pipeline_mode<synchronous>, transform_indices = @transform_1, window_bounds = array<i64: 32, 48>}, {pipeline_mode = #tpu.pipeline_mode<synchronous>, transform_indices = @transform_2, window_bounds = array<i64: 1, 48>}, {transform_indices = @transform_3, window_bounds = array<i64: 1, 8, 16>}]} {
    %c0 = arith.constant 0 : index
    %c0_0 = arith.constant 0 : index
    %c0_1 = arith.constant 0 : index
    %0 = vector.load %arg1[%c0, %c0_0, %c0_1] : memref<1x8x32xf32, #tpu.memory_space<vmem>>, vector<1x8x32xf32>
    %1 = vector.shape_cast %0 : vector<1x8x32xf32> to vector<8x32xf32>
    %c0_2 = arith.constant 0 : index
    %c0_3 = arith.constant 0 : index
    %2 = vector.load %arg2[%c0_2, %c0_3] : memref<32x48xf32, #tpu.memory_space<vmem>>, vector<32x48xf32>
    %cst = arith.constant dense<0.000000e+00> : vector<8x48xf32>
    %3 = tpu.matmul %1, %2, %cst {dimension_numbers = #tpu.dot_dimension_numbers<[1], [0], [0], [1], [0, 0, 1, 1], [], []>} : vector<8x32xf32>, vector<32x48xf32>, vector<8x48xf32> -> vector<8x48xf32>
    %c0_4 = arith.constant 0 : index
    %c0_5 = arith.constant 0 : index
    %4 = vector.load %arg3[%c0_4, %c0_5] : memref<1x48xf32, #tpu.memory_space<vmem>>, vector<1x48xf32>
    %5 = vector.broadcast %4 : vector<1x48xf32> to vector<8x48xf32>
    %6 = arith.addf %3, %5 : vector<8x48xf32>
    %7 = vector.extract_strided_slice %6 {offsets = [0, 0], sizes = [8, 16], strides = [1, 1]} : vector<8x48xf32> to vector<8x16xf32>
    %8 = vector.extract_strided_slice %6 {offsets = [0, 16], sizes = [8, 16], strides = [1, 1]} : vector<8x48xf32> to vector<8x16xf32>
    %9 = vector.extract_strided_slice %6 {offsets = [0, 32], sizes = [8, 16], strides = [1, 1]} : vector<8x48xf32> to vector<8x16xf32>
    %cst_6 = arith.constant dense<0.000000e+00> : vector<8x8xf32>
    %10 = tpu.matmul %7, %8, %cst_6 {dimension_numbers = #tpu.dot_dimension_numbers<[1], [1], [0], [0], [0, 0, 1, 0], [], []>} : vector<8x16xf32>, vector<8x16xf32>, vector<8x8xf32> -> vector<8x8xf32>
    %11 = tpu.iota {dimensions = array<i32: 0>} : vector<8x8xi32>
    %12 = tpu.iota {dimensions = array<i32: 1>} : vector<8x8xi32>
    %13 = arith.cmpi sgt, %12, %11 : vector<8x8xi32>
    %cst_7 = arith.constant 0xFF800000 : f32
    %14 = vector.broadcast %cst_7 : f32 to vector<8x8xf32>
    %15 = arith.select %13, %14, %10 : vector<8x8xi1>, vector<8x8xf32>
    %cst_8 = arith.constant dense<0xFF800000> : vector<8xf32>
    %16 = vector.multi_reduction <maximumf>, %15, %cst_8 [1] : vector<8x8xf32> to vector<8xf32>
    %17 = vector.shape_cast %16 : vector<8xf32> to vector<8x1xf32>
    %18 = vector.broadcast %17 : vector<8x1xf32> to vector<8x8xf32>
    %19 = arith.subf %15, %18 : vector<8x8xf32>
    %20 = math.exp %19 : vector<8x8xf32>
    %cst_9 = arith.constant dense<0.000000e+00> : vector<8xf32>
    %21 = vector.multi_reduction <add>, %20, %cst_9 [1] : vector<8x8xf32> to vector<8xf32>
    %22 = vector.shape_cast %21 : vector<8xf32> to vector<8x1xf32>
    %23 = tpu.reciprocal %22 {approx = true} : vector<8x1xf32> -> vector<8x1xf32>
    %24 = arith.mulf %22, %23 : vector<8x1xf32>
    %cst_10 = arith.constant 2.000000e+00 : f32
    %25 = vector.broadcast %cst_10 : f32 to vector<8x1xf32>
    %26 = arith.subf %25, %24 : vector<8x1xf32>
    %27 = arith.mulf %23, %26 : vector<8x1xf32>
    %28 = vector.broadcast %27 : vector<8x1xf32> to vector<8x8xf32>
    %29 = arith.mulf %20, %28 : vector<8x8xf32>
    %cst_11 = arith.constant dense<0.000000e+00> : vector<8x16xf32>
    %30 = tpu.matmul %29, %9, %cst_11 {dimension_numbers = #tpu.dot_dimension_numbers<[1], [0], [0], [1], [0, 0, 1, 1], [], []>} : vector<8x8xf32>, vector<8x16xf32>, vector<8x16xf32> -> vector<8x16xf32>
    %c0_12 = arith.constant 0 : index
    %c0_13 = arith.constant 0 : index
    %c0_14 = arith.constant 0 : index
    %31 = vector.load %arg4[%c0_12, %c0_13, %c0_14] : memref<1x8x16xf32, #tpu.memory_space<vmem>>, vector<1x8x16xf32>
    %32 = vector.shape_cast %31 : vector<1x8x16xf32> to vector<8x16xf32>
    %33 = vector.shape_cast %30 : vector<8x16xf32> to vector<1x8x16xf32>
    tpu.vector_store %arg4[%c0_12, %c0_13, %c0_14], %33 {strides = array<i32>} : memref<1x8x16xf32, #tpu.memory_space<vmem>>, vector<1x8x16xf32>,
    return
  }
  func.func @transform_0(%arg0: i32) -> (i32, i32, i32) {
    %c0_i32 = arith.constant 0 : i32
    %c0_i32_0 = arith.constant 0 : i32
    %c0_i32_1 = arith.constant 0 : i32
    return %arg0, %c0_i32, %c0_i32_0 : i32, i32, i32
  }
  func.func @transform_1(%arg0: i32) -> (i32, i32) {
    %c0_i32 = arith.constant 0 : i32
    %c0_i32_0 = arith.constant 0 : i32
    %c0_i32_1 = arith.constant 0 : i32
    return %c0_i32, %c0_i32_0 : i32, i32
  }
  func.func @transform_2(%arg0: i32) -> (i32, i32) {
    %c0_i32 = arith.constant 0 : i32
    %c0_i32_0 = arith.constant 0 : i32
    %c0_i32_1 = arith.constant 0 : i32
    return %c0_i32, %c0_i32_0 : i32, i32
  }
  func.func @transform_3(%arg0: i32) -> (i32, i32, i32) {
    %c0_i32 = arith.constant 0 : i32
    %c0_i32_0 = arith.constant 0 : i32
    %c0_i32_1 = arith.constant 0 : i32
    return %arg0, %c0_i32, %c0_i32_0 : i32, i32, i32
  }
}

</mosaic_0001>

<bundles_post_ra>
// kernel: tpu_custom_call.1
= control target key start
LH: loop header
LB: loop body
LE: loop exit
PB: predicated region body
PF: predicated region fallthrough
CT: control target
= control target key end

     0   :  { %8 = vsyncpa [#allocation3], 0  ;;  %s1008_s0 = inlined_call_operand.hbm [shape: f32[2,8,32], index: 0, kind: input, shape index: {}]   ;;  %s1009_s1 = inlined_call_operand.hbm [shape: f32[32,48], index: 1, kind: input, shape index: {}]   ;;  %s1010_s2 = inlined_call_operand.vmem [shape: f32[1,48], index: 2, kind: input, shape index: {}]   ;;  %s1011_s3 = inlined_call_operand.hbm [shape: f32[2,8,16], index: 3, kind: output, shape index: {}]  }
   0x1   :  { %10 = vsyncpa [#allocation3 + $0x1], 0 }
   0x2   :  { %11 = vsyncpa [#allocation6], 0 }
   0x3   :  { %12 = vsyncpa [#allocation4], 0 }
   0x4   :  { %14 = vsyncpa [#allocation4 + $0x1], 0  ;;  %s826_s12 = smov 0   ;;  %s828_s13 = smov 0  }
   0x5   :  { %s830_s14 = smov 0   ;;  %s832_s15 = smov 0  }
   0x6 LB: > { %s847_s16 = sadd.s32 4294967295, %s795_s15   ;;  %s557_s17 = sadd.s32 4294967294, %s795_s15   ;;  %s795_s15 = sphi %s832_s15, %s1033_s15   ;;  %s791_s14 = sphi %s830_s14, %s1032_s14   ;;  %s787_s13 = sphi %s828_s13, %s1031_s13   ;;  %s783_s12 = sphi %s826_s12, %s1030_s12  }
   0x7   : > { %p40_p0 = scmp.ne.s32.totalorder %s787_s13, %s783_s12  ;;  %p1012_p1 = scmp.eq.s32.totalorder %s847_s16, 0 }
   0x8   : > { %p112_p3 = scmp.eq.s32.totalorder %s557_s17, 1  ;;  %p558_p5 = scmp.ge.s32.totalorder %s795_s15, 1 }
   0x9   : > { %p856_p4 = por %p1012_p1, %p40_p0  ;;  %p119_p7 = scmp.lt.s32.totalorder %s795_s15, 3 }
   0xa   : > { %p861_p6 = por %p112_p3, %p40_p0  ;;  %s797_s21 = smov [#allocation5]  }
   0xb   : > { %s1016_s18 = scalar_select %p856_p4, 1, 0 }
   0xc   : > { %s1017_s19 = scalar_select %p861_p6, 1, 0 }
   0xd   : > { %p866_p8 = pnand %p558_p5, %p119_p7  ;;  %s131_s22 = sshll.u32 %s797_s21, 4  ;;  %s132_s22 = int_to_ptr.vmem [resolvable:$true] %s131_s22 }
   0xe   : > { %s880_s24 = sadd.s32 1, %s795_s15   ;;  %s27_s25 = sadd.s32 1, %s791_s14 }
   0xf   : > { %s1018_s20 = scalar_select %p866_p8, 1, 0 }
  0x10   : > { %p614_p9 = pneg %p866_p8  ;;  %s24_s26 = ssub.s32 %s795_s15, %s880_s24 }
  0x11   : > { %s684_s27 = scalar_lea.vmem %s132_s22, 512  ;;  %p692_p5 = scmp.lt.s32.totalorder %s132_s22, %s132_s22 }
  0x12   : > { %p875_p11 = pnand %p614_p9, %p1012_p1  ;;  %p685_p13 = scmp.ne.s32.totalorder %s132_s22, %s684_s27 }
  0x13   : > { %p693_p7 = scmp.lt.s32.totalorder %s684_s27, %s684_s27 }
  0x14   : > { %p675_p12 = pneg %p875_p11 }
  0x15   : > { %p694_p10 = por %p693_p7, %p692_p5 }
  0x16   : > { %p687_p0 = pnand %p685_p13, %p675_p12 }
  0x18   : > { %p688_p3 = pneg %p687_p0 }
  0x1a   : > { %p695_p2 = pnand %p694_p10, %p688_p3 }
  0x1c   : > { %698 = shalt.err (!%p695_p2)
}
  0x1d   : > { %s798_s28 = smov 128   ;;  %s799_s29 = smov 8  }
  0x1e   : > { %617 = dma.hbm_to_vmem [thread:$0]  (!%p875_p11), %s1009_s1, 512, %s132_s22, [#allocation6], %s798_s28, %s798_s28, %s799_s29  }
  0x1f   : > { %p25_p9 = scmp.eq.s32.totalorder %s24_s26, 0  ;;  %p34_p12 = scmp.ne.s32.totalorder %s791_s14, %s787_s13 }
  0x20   : > { %p35_p10 = scmp.eq.s32.totalorder %s795_s15, 0  ;;  %p627_p2 = scmp.lt.s32.totalorder %s795_s15, 2 }
  0x21   : > { %s897_s5 = scalar_select %p25_p9, %s791_s14, %s27_s25  }
  0x22   : > { %p36_p13 = por %p35_p10, %p34_p12  ;;  %p1020_p0 = scmp.eq.s32.totalorder %s847_s16, 1 }
  0x23   : > { %s148_s7 = sand.u32 1, %s791_s14   ;;  %s562_s8 = sshll.u32 %s795_s15, 7 }
  0x24   : > { %p901_p3 = por %p1020_p0, %p34_p12  ;;  %s561_s9 = sshll.u32 %s148_s7, 3 }
  0x25   : > { %s910_s17 = scalar_lea.hbm %s1008_s0, %s562_s8  ;;  %s152_s21 = scalar_lea.vmem [#allocation2], %s561_s9 }
  0x26   : > { %s1021_s6 = scalar_select %p901_p3, 1, 0 }
  0x27   : > { %s159_s22 = sshll.u32 %s152_s21, 4  ;;  %p912_p11 = pnand %p627_p2, %p36_p13  ;;  %s160_s22 = int_to_ptr.vmem [resolvable:$true] %s159_s22 }
  0x28   : > { %s149_s25 = scalar_lea.sflag [#allocation3], %s148_s7  ;;  %s699_s26 = scalar_lea.hbm %s910_s17, 128 }
  0x29   : > { %p700_p5 = scmp.ne.s32.totalorder %s910_s17, %s699_s26  ;;  %p701_p7 = pneg %p912_p11 }
  0x2a   : > { %s704_s29 = scalar_lea.hbm %s1008_s0, 256  ;;  %p705_p10 = scmp.lt.s32.totalorder %s910_s17, %s1008_s0 }
  0x2b   : > { %p702_p9 = pnand %p701_p7, %p700_p5  ;;  %p706_p2 = scmp.lt.s32.totalorder %s704_s29, %s699_s26 }
  0x2d   : > { %p703_p12 = pneg %p702_p9  ;;  %p707_p13 = por %p706_p2, %p705_p10 }
  0x2f   : > { %p708_p0 = pnand %p707_p13, %p703_p12 }
  0x31   : > { %711 = shalt.err (!%p708_p0)
}
  0x32   : > { %s712_s8 = scalar_lea.vmem %s160_s22, 128  ;;  %s800_s7 = smov [#allocation2]  }
  0x33   : > { %p713_p1 = scmp.ne.s32.totalorder %s160_s22, %s712_s8  ;;  %s717_s9 = sshll.u32 %s800_s7, 4  ;;  %s718_s9 = int_to_ptr.vmem [resolvable:$false] %s717_s9 }
  0x34   : > { %s719_s10 = scalar_lea.vmem %s718_s9, 256  ;;  %p720_p5 = scmp.lt.s32.totalorder %s160_s22, %s718_s9 }
  0x35   : > { %p715_p6 = pnand %p713_p1, %p701_p7  ;;  %p721_p9 = scmp.lt.s32.totalorder %s719_s10, %s712_s8 }
  0x37   : > { %p716_p3 = pneg %p715_p6  ;;  %p722_p4 = por %p721_p9, %p720_p5 }
  0x39   : > { %p723_p8 = pnand %p722_p4, %p716_p3 }
  0x3b   : > { %726 = shalt.err (!%p723_p8)
}
  0x3c   : > { %621 = dma.hbm_to_vmem [thread:$0]  (!%p912_p11), %s910_s17, 128, %s160_s22, %s149_s25  }
  0x3d   : > { %p1023_p12 = scmp.ne.s32.totalorder %s1018_s20, 0 }
  0x3e   : > { %s933_s11 = sand.u32 (!%p1023_p12), 1, %s787_s13   ;;  %p1024_p1 = scmp.ne.s32.totalorder (!%p1023_p12), %s1016_s18, 0 }
  0x3f   : > { %168 = sbr.rel (%p1023_p12) target bundleno = 1114 (0x45a), region = 32  ;;  %s564_s21 = sshll.u32 (!%p1023_p12), %s933_s11, 3 }
  0x40   : > { %s171_s26 = scalar_lea.sflag (!%p1023_p12), [#allocation3], %s933_s11  ;;  %s174_s27 = scalar_lea.vmem (!%p1023_p12), [#allocation2], %s564_s21 }
  0x44   : > { %770 = dma.done.wait (%p1024_p1), %s171_s26, 128  }
  0x45   : > { %772 = vsyncadd (%p1024_p1), %s171_s26, 4294967168  ;;  %p1025_p4 = scmp.eq.s32.totalorder %s847_s16, 0 }
  0x47   : > { %774 = dma.done.wait (%p1025_p4), [#allocation6], 512   ;;  %p1026_p6 = pmov %p1025_p4 }
  0x48   : > { %v801_v0 = vmov 0.0   ;;  %vm802_vm0 = vmmov 0   ;;  %v205_v1 = vld [vmem:[#allocation5 + $0x18] sm:$0xff]  ;;  %v204_v2 = vld [vmem:[#allocation5 + $0x10] sm:$0xff]  ;;  %v203_v3 = vld [vmem:[#allocation5 + $0x8] sm:$0xff]  ;;  %vm213_vm1 = vcmask 261120   ;;  %v365_v11 = vlaneseq }
  0x49   : > { %776 = vsyncadd (%p1026_p6), [#allocation6], 4294966784  ;;  %585 = vmatprep.subr.mxu0 %v801_v0  ;;  %593 = vmatprep.mubr.msk.f32.mxu0 %vm802_vm0, %v801_v0  ;;  %v202_v4 = vld [vmem:[#allocation5] sm:$0xff]  ;;  %v201_v5 = vld [vmem:[%s174_s27] sm:$0xff]  ;;  %s803_s17 = smov 112   ;;  %vm290_vm2 = vcmask 130048  }
  0x4a   : > { %596 = vmatprep.subr.mxu1 %v801_v0  ;;  %598 = vmatprep.mubr.msk.f32.mxu1 %vm802_vm0, %v801_v0  ;;  %v567_v6 = vld [vmem:[%s1010_s2] ss:$0 sm:$0xff]  ;;  %v366_v12 = vshrl.u32 %v365_v11, 7  ;;  %v368_v13 = vand.u32 127, %v365_v11  ;;  %vm371_vm4 = vcmask 64512   ;;  %s804_s22 = smov 96  }
  0x4b   : > { %586 = vmatpush3.msra.mxu0 %v205_v1  ;;  %s573_s23 = sshll.u32 %s847_s16, 7  ;;  %s200_s25 = scalar_lea.vmem [#allocation7], %s564_s21 }
  0x4c   : > { %587 = vmatprep.subr.mxu0 %v801_v0  ;;  %vm369_vm3 = vcmp.gt.s32.totalorder %v368_v13, %v366_v12  ;;  %s477_s28 = sshll.u32 %s200_s25, 4  ;;  %s964_s4 = scalar_lea.hbm %s1011_s3, %s573_s23  ;;  %s966_s28 = int_to_ptr.vmem [resolvable:$true] %s477_s28 }
  0x4d   : > { %588 = vmatpush3.msra.mxu0 %v204_v2  ;;  %s464_s8 = scalar_lea.sflag [#allocation4], %s933_s11  ;;  %s727_s7 = scalar_lea.vmem %s966_s28, 128 }
  0x4e   : > { %589 = vmatprep.subr.mxu0 %v801_v0  ;;  %p728_p8 = scmp.ne.s32.totalorder %s966_s28, %s727_s7  ;;  %p1027_p3 = scmp.ne.s32.totalorder %s1021_s6, 0 }
  0x4f   : > { %590 = vmatpush3.msra.mxu0 %v203_v3  ;;  %s805_s16 = smov [#allocation7]  }
  0x50   : > { %591 = vmatprep.subr.mxu0 %v801_v0  ;;  %p729_p11 = pnand %p728_p8, %p1027_p3  ;;  %s731_s9 = sshll.u32 %s805_s16, 4  ;;  %s732_s9 = int_to_ptr.vmem [resolvable:$false] %s731_s9 }
  0x51   : > { %592 = vmatpush3.msra.mxu0 %v202_v4  ;;  %s733_s10 = scalar_lea.vmem %s732_s9, 256  ;;  %p734_p10 = scmp.lt.s32.totalorder %s966_s28, %s732_s9 }
  0x52   : > { %594 = vmatmul.mubr.msk.f32.vlgmr.msra.gmra.mxu0 %vm213_vm1, %v201_v5  ;;  %p730_p7 = pneg %p729_p11  ;;  %p735_p2 = scmp.lt.s32.totalorder %s733_s10, %s727_s7 }
  0x54   : > { %p736_p13 = por %p735_p2, %p734_p10 }
  0x56   : > { %p737_p0 = pnand %p736_p13, %p730_p7 }
 0x112   : > { %v283_v7 = vpop.f32.mrf.mxu0 }
 0x113   : > { %v284_v8 = vadd.f32 %v567_v6, %v283_v7 }
 0x114   : > { %v595_v9 = vpop.f32.mrf.mxu0 }
 0x115   : > { %288 = vrot.lane.b32.xlu0 %v284_v8, %s803_s17 }
 0x187   : > { %v289_v10 = vpop.permute.xlu0 %288 }
 0x188   : > { %597 = vmatpush3.xpose.msk.msra.mxu1 %vm290_vm2, %v289_v10 }
 0x189   : > { %601 = vmatprep.subr.mxu1 %v801_v0 }
 0x18b   : > { %599 = vmatmul.mubr.msk.f32.vlgmr.msra.gmra.mxu1 %vm290_vm2, %v284_v8 }
 0x18c   : > { %603 = vmatprep.mubr.msk.f32.mxu1 %vm802_vm0, %v801_v0 }
 0x24b   : > { %v361_v14 = vpop.f32.mrf.mxu1 }
 0x24c   : > { %v370_v15 = vsel %vm369_vm3, -inf, %v361_v14 }
 0x24d   : > { %v600_v16 = vpop.f32.mrf.mxu1  ;;  %v372_v17 = vsel %vm371_vm4, %v370_v15, -inf }
 0x24e   : > { %373 = vmax.xlane.f32.xlu0 %v372_v17 }
 0x2d7   : > { %v374_v18 = vpop.xlane.xlu0 %373 }
 0x2d8   : > { %v375_v19 = vsub.f32 %v370_v15, %v374_v18 }
 0x2da   : > { %v376_v20 = vmul.f32 1.442695, %v375_v19 }
 0x2dc   : > { %669 = vpow2.f32 %v376_v20 }
 0x2e9   : > { %v670_v21 = vpop.eup %669 }
 0x2ea   : > { %v378_v22 = vsel %vm371_vm4, %v670_v21, 0.0 }
 0x2eb   : > { %379 = vadd.xlane.f32.xlu1 %v378_v22 }
 0x2fc   : > { %386 = vrot.lane.b32.xlu1 %v284_v8, %s804_s22 }
 0x374   : > { %v380_v23 = vpop.xlane.xlu1 %379 }
 0x375   : > { %671 = vrcp.f32 %v380_v23 }
 0x378   : > { %v387_v24 = vpop.permute.xlu1 %386 }
 0x379   : > { %602 = vmatpush3.msra.mxu1 %v387_v24 }
 0x382   : > { %v672_v25 = vpop.eup %671 }
 0x383   : > { %v382_v26 = vmul.f32 %v672_v25, %v380_v23 }
 0x385   : > { %v383_v27 = vsub.f32 2.0, %v382_v26 }
 0x387   : > { %v384_v28 = vmul.f32 %v672_v25, %v383_v27 }
 0x389   : > { %v385_v29 = vmul.f32 %v670_v21, %v384_v28 }
 0x38b   : > { %604 = vmatmul.mubr.msk.f32.vlgmr.msra.gmra.mxu1 %vm371_vm4, %v385_v29 }
 0x44b   : > { %v458_v30 = vpop.f32.mrf.mxu1 }
 0x44c   : > { %462 = vst.msk [vmem:[%s200_s25] sm:$0xff] %vm290_vm2, %v458_v30 }
 0x44d   : > { %v605_v31 = vpop.f32.mrf.mxu1 }
 0x44e   : > { %740 = shalt.err (!%p737_p0)
}
 0x44f   : > { %s741_s21 = scalar_lea.hbm %s964_s4, 128  ;;  %s745_s27 = scalar_lea.hbm %s1011_s3, 256 }
 0x450   : > { %p742_p5 = scmp.ne.s32.totalorder %s964_s4, %s741_s21  ;;  %p746_p1 = scmp.lt.s32.totalorder %s964_s4, %s1011_s3 }
 0x451   : > { %p747_p4 = scmp.lt.s32.totalorder %s745_s27, %s741_s21 }
 0x452   : > { %p743_p9 = pnand %p742_p5, %p1027_p3 }
 0x453   : > { %p748_p6 = por %p747_p4, %p746_p1 }
 0x454   : > { %p744_p12 = pneg %p743_p9 }
 0x456   : > { %p749_p8 = pnand %p748_p6, %p744_p12 }
 0x458   : > { %752 = shalt.err (!%p749_p8)
}
 0x459   : > { %612 = dma.vmem_to_hbm [thread:$0]  (%p1027_p3), %s966_s28, 128, %s964_s4, %s464_s8  }
 0x45a PF: > { %s489_s17 = sand.u32 1, %s783_s12   ;;  %p1028_p11 = scmp.ne.s32.totalorder %s1017_s19, 0 }
 0x45b   : > { %p1029_p7 = scmp.ge.s32.totalorder %s795_s15, 2  ;;  %s490_s22 = scalar_lea.sflag [#allocation4], %s489_s17 }
 0x45d   : > { %p623_p10 = pnand %p1029_p7, %p1028_p11 }
 0x45f   : > { %p624_p2 = pneg %p623_p10 }
 0x461   : > { %778 = dma.done.wait (%p624_p2), %s490_s22, 128  }
 0x462   : > { %780 = vsyncadd (%p624_p2), %s490_s22, 4294967168  ;;  %p17_p13 = scmp.ge.s32.totalorder %s880_s24, 4   ;;  %s1030_s12 = smov %s787_s13 }
 0x463   : > { %s1031_s13 = smov %s791_s14  ;;  %s1032_s14 = smov %s897_s5 }
 0x464   : > { %s1033_s15 = smov %s880_s24  ;;  %19 = sbr.rel (!%p17_p13) target bundleno = 6 (0x6), region = 81 }
 0x469   :  { %495 = vsyncpa [#allocation3], 1 }
 0x46a   :  { %497 = vsyncpa [#allocation3 + $0x1], 1 }
 0x46b   :  { %498 = vsyncpa [#allocation6], 1 }
 0x46c   :  { %499 = vsyncpa [#allocation4], 1 }
 0x46d   :  { %501 = vsyncpa [#allocation4 + $0x1], 1 }

</bundles_post_ra>
